<compile_context>
chip_gen: v6e
topology: v6e:2x2x1
jax: 0.10.0
libtpu: 0.0.40
codegen_flags: <defaults>
</compile_context>

<pallas_src>
import jax
import jax.numpy as jnp
from jax.experimental import pallas as pl
from jax.experimental.pallas import tpu as pltpu


# ---------------------------------------------------------------------------
# Pallas kernel: fused 1x1 conv (BN scale pre-folded) + bias + ReLU, NCHW-native
# ---------------------------------------------------------------------------
def _conv_bias_relu_kernel(x_ref, w_ref, b_ref, o_ref):
    # x_ref: (tile_t, C_in, tile_hw)  bf16   -- NCHW-native spatial tile
    # w_ref: (C_out, C_in)            bf16   -- BN scale already folded in
    # b_ref: (C_out, 1)               f32    -- folded BN bias
    # o_ref: (tile_t, C_out, tile_hw) f32
    w = w_ref[...]
    b = b_ref[...]
    for i in range(x_ref.shape[0]):  # static, small unroll over frames in this block
        y = jnp.dot(w, x_ref[i], preferred_element_type=jnp.float32)  # (C_out, tile_hw)
        o_ref[i] = jnp.maximum(y + b, 0.0).astype(o_ref.dtype)


_MAX_LANE_ELEMS = 2048   # spatial-tile budget (multiple of 128 -> lane-dense stores)
_MAX_FRAME_TILE = 8      # cap on frames packed per block (bounds kernel unroll)


def _pick_tiles(nt, hw):
    """Pick (tile_t, tile_hw): big blocks, but keep >=2 grid steps when possible."""
    if hw >= _MAX_LANE_ELEMS:
        return 1, _MAX_LANE_ELEMS           # multiple of 128; remainder handled by cdiv+mask
    tile_hw = hw                            # full spatial extent (always a legal block dim)
    tile_t = 1
    cap = min(_MAX_FRAME_TILE, max(1, _MAX_LANE_ELEMS // hw))
    for cand in range(2, cap + 1):
        if nt % cand == 0 and nt // cand >= 2:
            tile_t = cand
    return tile_t, tile_hw


def conv_bn_relu_pallas(x3, w, bias):
    """x3: (nt, C_in, HW) bf16; w: (C_out, C_in) bf16; bias: (C_out, 1) f32.
    Returns (nt, C_out, HW) f32 = relu(w @ x + bias) per frame (NCHW layout kept)."""
    nt, c_in, hw = x3.shape
    c_out = w.shape[0]
    tile_t, tile_hw = _pick_tiles(nt, hw)
    grid = (nt // tile_t, pl.cdiv(hw, tile_hw))
    return pl.pallas_call(
        _conv_bias_relu_kernel,
        out_shape=jax.ShapeDtypeStruct((nt, c_out, hw), jnp.float32),
        grid_spec=pltpu.PrefetchScalarGridSpec(
            num_scalar_prefetch=0,
            grid=grid,
            in_specs=[
                pl.BlockSpec((tile_t, c_in, tile_hw), lambda t, j: (t, 0, j)),
                pl.BlockSpec((c_out, c_in), lambda t, j: (0, 0)),
                pl.BlockSpec((c_out, 1), lambda t, j: (0, 0)),
            ],
            out_specs=pl.BlockSpec((tile_t, c_out, tile_hw), lambda t, j: (t, 0, j)),
        ),
        compiler_params=pltpu.CompilerParams(
            dimension_semantics=("parallel", "parallel")),
    )(x3, w, bias)


# ---------------------------------------------------------------------------
# TemporalShift (TSM) — pure data movement, XLA layout glue (concat of slices)
# ---------------------------------------------------------------------------
def temporal_shift(x3, n_segment, n_div):
    """x3: (nt, C, HW). Channels [0:fold) shift left in time, [fold:2*fold) shift right
    (zero-padded at segment boundaries), the rest pass through."""
    nt, c, hw = x3.shape
    n_batch = nt // n_segment
    fold = c // n_div
    xr = x3.reshape(n_batch, n_segment, c, hw)
    zpad = jnp.zeros((n_batch, 1, fold, hw), x3.dtype)
    left = jnp.concatenate([xr[:, 1:, :fold], zpad], axis=1)                 # shift left
    right = jnp.concatenate([zpad, xr[:, :-1, fold:2 * fold]], axis=1)       # shift right
    keep = xr[:, :, 2 * fold:]                                               # no shift
    return jnp.concatenate([left, right, keep], axis=2).reshape(nt, c, hw)


# ---------------------------------------------------------------------------
# Module
# ---------------------------------------------------------------------------
class FuseFastToSlow2DPallas:
    """JAX/Pallas port of FuseFastToSlow2D with deterministic synthetic params."""

    def __init__(self, dim_in, fusion_conv_channel_ratio, fusion_kernel, alpha,
                 n_segment, n_div, eps=1e-5, key=None):
        # fusion_kernel is unused: the 2D variant hard-codes a 1x1 conv.
        self.alpha = alpha
        self.n_segment = n_segment
        self.n_div = n_div
        self.c_in = dim_in
        self.c_out = dim_in * fusion_conv_channel_ratio // alpha

        key = jax.random.PRNGKey(0) if key is None else key
        k_w, k_g, k_b, k_m, k_v = jax.random.split(key, 5)
        # Conv2d weight (C_out, C_in, 1, 1), bias=False.
        w4 = 0.05 * jax.random.normal(k_w, (self.c_out, self.c_in, 1, 1), jnp.float32)
        w_oc_ic = w4[:, :, 0, 0]                                   # (C_out, C_in)
        # Inference-mode BatchNorm2d folded into per-channel scale/bias.
        gamma = 1.0 + 0.1 * jax.random.normal(k_g, (self.c_out,), jnp.float32)
        beta = 0.1 * jax.random.normal(k_b, (self.c_out,), jnp.float32)
        r_mean = 0.1 * jax.random.normal(k_m, (self.c_out,), jnp.float32)
        r_var = jnp.abs(jax.random.normal(k_v, (self.c_out,), jnp.float32)) + 0.5
        scale = gamma / jnp.sqrt(r_var + eps)
        # Fold the BN scale into the conv weight: kernel only does (+bias, ReLU).
        self.w_fold_f32 = w_oc_ic * scale[:, None]                 # (C_out, C_in) f32 (ref)
        self.w_fold = self.w_fold_f32.astype(jnp.bfloat16)         # kernel weight, bf16
        self.bias_col = (beta - r_mean * scale).reshape(self.c_out, 1)   # (C_out, 1) f32

    def __call__(self, x):
        x_s, x_f = x[0], x[1]
        nt, c, h, w = x_f.shape
        # NCHW-native path: merge H,W (free reshape), cast to bf16, TSM shift.
        x3 = x_f.astype(jnp.bfloat16).reshape(nt, c, h * w)
        x3 = temporal_shift(x3, self.n_segment, self.n_div)
        # Fused 1x1 conv + BN + ReLU; output stays NCHW (nt, C_out, H*W), f32.
        y3 = conv_bn_relu_pallas(x3, self.w_fold, self.bias_col)
        # fuse.view(nt // alpha, C_out * alpha, h, w): free row-major reshape on NCHW.
        fuse = y3.reshape(nt // self.alpha, self.c_out * self.alpha, h, w)
        x_s_fuse = jnp.concatenate([x_s, fuse], axis=1)
        return [x_s_fuse, x_f]


if __name__ == "__main__":
    key = jax.random.PRNGKey(0)

    # Module config (small, consistent with the forward's constraints).
    dim_in = 16
    fusion_conv_channel_ratio = 2
    fusion_kernel = 5          # unused by the 2D variant (1x1 conv)
    alpha = 4
    n_segment = 8
    n_div = 8

    # Fast frames must be a multiple of n_segment and alpha.
    nt_f = 8
    nt_s = nt_f // alpha
    slow_channels = 32
    H = W = 16                 # H*W = 256 -> lane-dense spatial tile (>=128)

    k_s, k_f, k_p = jax.random.split(key, 3)
    x_s = jax.random.normal(k_s, (nt_s, slow_channels, H, W), jnp.float32)
    x_f = jax.random.normal(k_f, (nt_f, dim_in, H, W), jnp.float32)

    module = FuseFastToSlow2DPallas(dim_in, fusion_conv_channel_ratio,
                                    fusion_kernel, alpha, n_segment, n_div,
                                    key=k_p)
    out = module([x_s, x_f])
    jax.block_until_ready(out)

    fused_c = slow_channels + dim_in * fusion_conv_channel_ratio
    assert out[0].shape == (nt_s, fused_c, H, W), out[0].shape
    assert out[1].shape == x_f.shape, out[1].shape

    # Pure-JAX f32 reference for the fused (shift -> 1x1 conv -> BN -> ReLU) path.
    x3_ref = temporal_shift(x_f.reshape(nt_f, dim_in, H * W), n_segment, n_div)
    y_ref = jnp.einsum('oc,ncs->nos', module.w_fold_f32, x3_ref) + module.bias_col[None]
    y_ref = jnp.maximum(y_ref, 0.0)
    fuse_ref = y_ref.reshape(nt_f // alpha, module.c_out * alpha, H, W)
    ref0 = jnp.concatenate([x_s, fuse_ref], axis=1)
    err = float(jnp.max(jnp.abs(out[0] - ref0)))
    assert err < 5e-2, f"max abs err {err}"  # bf16 inputs, f32 accumulation

    print("KERNEL_OK")
</pallas_src>

<mosaic_0001>
module attributes {stable_mosaic.version = 11 : i64} {
  func.func @_conv_bias_relu_kernel(%arg0: i32, %arg1: i32, %arg2: memref<4x16x256xbf16, #tpu.memory_space<vmem>>, %arg3: memref<8x16xbf16, #tpu.memory_space<vmem>>, %arg4: memref<8x1xf32, #tpu.memory_space<vmem>>, %arg5: memref<4x8x256xf32, #tpu.memory_space<vmem>>) attributes {dimension_semantics = [#tpu.dimension_semantics<parallel>, #tpu.dimension_semantics<parallel>], iteration_bounds = array<i64: 2, 1>, scalar_prefetch = 0 : i64, scratch_operands = 0 : i64, tpu.core_type = #tpu.core_type<tc>, window_params = [{transform_indices = @transform_0, window_bounds = array<i64: 4, 16, 256>}, {pipeline_mode = #tpu.pipeline_mode<synchronous>, transform_indices = @transform_1, window_bounds = array<i64: 8, 16>}, {pipeline_mode = #tpu.pipeline_mode<synchronous>, transform_indices = @transform_2, window_bounds = array<i64: 8, 1>}, {transform_indices = @transform_3, window_bounds = array<i64: 4, 8, 256>}]} {
    %c0 = arith.constant 0 : index
    %c0_0 = arith.constant 0 : index
    %0 = vector.load %arg3[%c0, %c0_0] : memref<8x16xbf16, #tpu.memory_space<vmem>>, vector<8x16xbf16>
    %c0_1 = arith.constant 0 : index
    %c0_2 = arith.constant 0 : index
    %1 = vector.load %arg4[%c0_1, %c0_2] : memref<8x1xf32, #tpu.memory_space<vmem>>, vector<8x1xf32>
    %c0_3 = arith.constant 0 : index
    %c0_4 = arith.constant 0 : index
    %c0_5 = arith.constant 0 : index
    %2 = vector.load %arg2[%c0_3, %c0_4, %c0_5] : memref<4x16x256xbf16, #tpu.memory_space<vmem>>, vector<1x16x256xbf16>
    %3 = vector.shape_cast %2 : vector<1x16x256xbf16> to vector<16x256xbf16>
    %cst = arith.constant dense<0.000000e+00> : vector<8x256xf32>
    %4 = tpu.matmul %0, %3, %cst {dimension_numbers = #tpu.dot_dimension_numbers<[1], [0], [0], [1], [0, 0, 1, 1], [], []>} : vector<8x16xbf16>, vector<16x256xbf16>, vector<8x256xf32> -> vector<8x256xf32>
    %5 = vector.broadcast %1 : vector<8x1xf32> to vector<8x256xf32>
    %6 = arith.addf %4, %5 : vector<8x256xf32>
    %cst_6 = arith.constant 0.000000e+00 : f32
    %7 = vector.broadcast %cst_6 : f32 to vector<8x256xf32>
    %8 = arith.maximumf %6, %7 : vector<8x256xf32>
    %c0_7 = arith.constant 0 : index
    %c0_8 = arith.constant 0 : index
    %c0_9 = arith.constant 0 : index
    %9 = vector.load %arg5[%c0_7, %c0_8, %c0_9] : memref<4x8x256xf32, #tpu.memory_space<vmem>>, vector<1x8x256xf32>
    %10 = vector.shape_cast %9 : vector<1x8x256xf32> to vector<8x256xf32>
    %11 = vector.shape_cast %8 : vector<8x256xf32> to vector<1x8x256xf32>
    tpu.vector_store %arg5[%c0_7, %c0_8, %c0_9], %11 {strides = array<i32>} : memref<4x8x256xf32, #tpu.memory_space<vmem>>, vector<1x8x256xf32>,
    %c1 = arith.constant 1 : index
    %c0_10 = arith.constant 0 : index
    %c0_11 = arith.constant 0 : index
    %12 = vector.load %arg2[%c1, %c0_10, %c0_11] : memref<4x16x256xbf16, #tpu.memory_space<vmem>>, vector<1x16x256xbf16>
    %13 = vector.shape_cast %12 : vector<1x16x256xbf16> to vector<16x256xbf16>
    %cst_12 = arith.constant dense<0.000000e+00> : vector<8x256xf32>
    %14 = tpu.matmul %0, %13, %cst_12 {dimension_numbers = #tpu.dot_dimension_numbers<[1], [0], [0], [1], [0, 0, 1, 1], [], []>} : vector<8x16xbf16>, vector<16x256xbf16>, vector<8x256xf32> -> vector<8x256xf32>
    %15 = vector.broadcast %1 : vector<8x1xf32> to vector<8x256xf32>
    %16 = arith.addf %14, %15 : vector<8x256xf32>
    %cst_13 = arith.constant 0.000000e+00 : f32
    %17 = vector.broadcast %cst_13 : f32 to vector<8x256xf32>
    %18 = arith.maximumf %16, %17 : vector<8x256xf32>
    %c1_14 = arith.constant 1 : index
    %c0_15 = arith.constant 0 : index
    %c0_16 = arith.constant 0 : index
    %19 = vector.load %arg5[%c1_14, %c0_15, %c0_16] : memref<4x8x256xf32, #tpu.memory_space<vmem>>, vector<1x8x256xf32>
    %20 = vector.shape_cast %19 : vector<1x8x256xf32> to vector<8x256xf32>
    %21 = vector.shape_cast %18 : vector<8x256xf32> to vector<1x8x256xf32>
    tpu.vector_store %arg5[%c1_14, %c0_15, %c0_16], %21 {strides = array<i32>} : memref<4x8x256xf32, #tpu.memory_space<vmem>>, vector<1x8x256xf32>,
    %c2 = arith.constant 2 : index
    %c0_17 = arith.constant 0 : index
    %c0_18 = arith.constant 0 : index
    %22 = vector.load %arg2[%c2, %c0_17, %c0_18] : memref<4x16x256xbf16, #tpu.memory_space<vmem>>, vector<1x16x256xbf16>
    %23 = vector.shape_cast %22 : vector<1x16x256xbf16> to vector<16x256xbf16>
    %cst_19 = arith.constant dense<0.000000e+00> : vector<8x256xf32>
    %24 = tpu.matmul %0, %23, %cst_19 {dimension_numbers = #tpu.dot_dimension_numbers<[1], [0], [0], [1], [0, 0, 1, 1], [], []>} : vector<8x16xbf16>, vector<16x256xbf16>, vector<8x256xf32> -> vector<8x256xf32>
    %25 = vector.broadcast %1 : vector<8x1xf32> to vector<8x256xf32>
    %26 = arith.addf %24, %25 : vector<8x256xf32>
    %cst_20 = arith.constant 0.000000e+00 : f32
    %27 = vector.broadcast %cst_20 : f32 to vector<8x256xf32>
    %28 = arith.maximumf %26, %27 : vector<8x256xf32>
    %c2_21 = arith.constant 2 : index
    %c0_22 = arith.constant 0 : index
    %c0_23 = arith.constant 0 : index
    %29 = vector.load %arg5[%c2_21, %c0_22, %c0_23] : memref<4x8x256xf32, #tpu.memory_space<vmem>>, vector<1x8x256xf32>
    %30 = vector.shape_cast %29 : vector<1x8x256xf32> to vector<8x256xf32>
    %31 = vector.shape_cast %28 : vector<8x256xf32> to vector<1x8x256xf32>
    tpu.vector_store %arg5[%c2_21, %c0_22, %c0_23], %31 {strides = array<i32>} : memref<4x8x256xf32, #tpu.memory_space<vmem>>, vector<1x8x256xf32>,
    %c3 = arith.constant 3 : index
    %c0_24 = arith.constant 0 : index
    %c0_25 = arith.constant 0 : index
    %32 = vector.load %arg2[%c3, %c0_24, %c0_25] : memref<4x16x256xbf16, #tpu.memory_space<vmem>>, vector<1x16x256xbf16>
    %33 = vector.shape_cast %32 : vector<1x16x256xbf16> to vector<16x256xbf16>
    %cst_26 = arith.constant dense<0.000000e+00> : vector<8x256xf32>
    %34 = tpu.matmul %0, %33, %cst_26 {dimension_numbers = #tpu.dot_dimension_numbers<[1], [0], [0], [1], [0, 0, 1, 1], [], []>} : vector<8x16xbf16>, vector<16x256xbf16>, vector<8x256xf32> -> vector<8x256xf32>
    %35 = vector.broadcast %1 : vector<8x1xf32> to vector<8x256xf32>
    %36 = arith.addf %34, %35 : vector<8x256xf32>
    %cst_27 = arith.constant 0.000000e+00 : f32
    %37 = vector.broadcast %cst_27 : f32 to vector<8x256xf32>
    %38 = arith.maximumf %36, %37 : vector<8x256xf32>
    %c3_28 = arith.constant 3 : index
    %c0_29 = arith.constant 0 : index
    %c0_30 = arith.constant 0 : index
    %39 = vector.load %arg5[%c3_28, %c0_29, %c0_30] : memref<4x8x256xf32, #tpu.memory_space<vmem>>, vector<1x8x256xf32>
    %40 = vector.shape_cast %39 : vector<1x8x256xf32> to vector<8x256xf32>
    %41 = vector.shape_cast %38 : vector<8x256xf32> to vector<1x8x256xf32>
    tpu.vector_store %arg5[%c3_28, %c0_29, %c0_30], %41 {strides = array<i32>} : memref<4x8x256xf32, #tpu.memory_space<vmem>>, vector<1x8x256xf32>,
    return
  }
  func.func @transform_0(%arg0: i32, %arg1: i32) -> (i32, i32, i32) {
    %c0_i32 = arith.constant 0 : i32
    %c0_i32_0 = arith.constant 0 : i32
    return %arg0, %c0_i32, %arg1 : i32, i32, i32
  }
  func.func @transform_1(%arg0: i32, %arg1: i32) -> (i32, i32) {
    %c0_i32 = arith.constant 0 : i32
    %c0_i32_0 = arith.constant 0 : i32
    %c0_i32_1 = arith.constant 0 : i32
    return %c0_i32, %c0_i32_0 : i32, i32
  }
  func.func @transform_2(%arg0: i32, %arg1: i32) -> (i32, i32) {
    %c0_i32 = arith.constant 0 : i32
    %c0_i32_0 = arith.constant 0 : i32
    %c0_i32_1 = arith.constant 0 : i32
    return %c0_i32, %c0_i32_0 : i32, i32
  }
  func.func @transform_3(%arg0: i32, %arg1: i32) -> (i32, i32, i32) {
    %c0_i32 = arith.constant 0 : i32
    %c0_i32_0 = arith.constant 0 : i32
    return %arg0, %c0_i32, %arg1 : i32, i32, i32
  }
}

</mosaic_0001>

<bundles_post_ra>
// kernel: tpu_custom_call.1
= control target key start
LH: loop header
LB: loop body
LE: loop exit
PB: predicated region body
PF: predicated region fallthrough
CT: control target
= control target key end

     0   :  { %8 = vsyncpa [#allocation3], 0  ;;  %s991_s0 = inlined_call_operand.hbm [shape: bf16[8,16,256], index: 0, kind: input, shape index: {}]   ;;  %s992_s1 = inlined_call_operand.vmem [shape: bf16[8,16], index: 1, kind: input, shape index: {}]   ;;  %s993_s2 = inlined_call_operand.vmem [shape: f32[8,1], index: 2, kind: input, shape index: {}]   ;;  %s994_s3 = inlined_call_operand.hbm [shape: f32[8,8,256], index: 3, kind: output, shape index: {}]  }
   0x1   :  { %10 = vsyncpa [#allocation3 + $0x1], 0 }
   0x2   :  { %11 = vsyncpa [#allocation4], 0 }
   0x3   :  { %13 = vsyncpa [#allocation4 + $0x1], 0  ;;  %s824_s12 = smov 0   ;;  %s826_s13 = smov 0  }
   0x4   :  { %s828_s14 = smov 0   ;;  %s830_s15 = smov 0  }
   0x5   :  { %s832_s16 = smov 0   ;;  %s834_s17 = smov 0  }
   0x6 LB: > { %s562_s18 = sadd.s32 4294967295, %s795_s17   ;;  %s563_s19 = sadd.s32 4294967294, %s795_s17   ;;  %s795_s17 = sphi %s834_s17, %s19_s17   ;;  %s791_s16 = sphi %s832_s16, %s1005_s16   ;;  %s787_s15 = sphi %s830_s15, %s1004_s15   ;;  %s783_s14 = sphi %s828_s14, %s1003_s14   ;;  %s779_s13 = sphi %s826_s13, %s1002_s13   ;;  %s775_s12 = sphi %s824_s12, %s1001_s12  }
   0x7   : > { %s31_s20 = sadd.s32 1, %s791_s16  ;;  %s40_s21 = sadd.s32 1, %s783_s14 }
   0x8   : > { %p33_p0 = scmp.ge.s32.totalorder %s31_s20, 2  ;;  %p47_p1 = scmp.ne.s32.totalorder %s783_s14, %s779_s13 }
   0x9   : > { %p48_p2 = scmp.eq.s32.totalorder %s795_s17, 0  ;;  %p53_p3 = scmp.ne.s32.totalorder %s779_s13, %s775_s12 }
   0xa   : > { %s1007_s20 = smov (%p33_p0, %s31_s20), 0  ;;  %p54_p5 = scmp.eq.s32.totalorder %s562_s18, 0 }
   0xb   : > { %p865_p4 = por %p48_p2, %p47_p1  ;;  %s35_s23 = ssub.s32 %s791_s16, %s1007_s20 }
   0xc   : > { %p121_p6 = scmp.eq.s32.totalorder %s562_s18, 1  ;;  %p38_p7 = scmp.eq.s32.totalorder %s35_s23, 0 }
   0xd   : > { %p871_p8 = por %p54_p5, %p53_p3  ;;  %p127_p10 = scmp.eq.s32.totalorder %s563_s19, 1 }
   0xe   : > { %p875_p9 = por %p121_p6, %p47_p1  ;;  %p619_p13 = scmp.lt.s32.totalorder %s795_s17, 2 }
   0xf   : > { %s880_s26 = scalar_select %p38_p7, %s783_s14, %s40_s21  }
  0x10   : > { %p882_p11 = por %p127_p10, %p53_p3  ;;  %s153_s28 = sand.u32 1, %s783_s14  }
  0x11   : > { %s566_s29 = sshll.u32 %s153_s28, 6  ;;  %s604_s30 = sshll.u32 %s791_s16, 10 }
  0x12   : > { %s166_s6 = scalar_lea.hbm %s991_s0, %s604_s30  ;;  %s157_s7 = scalar_lea.vmem [#allocation2], %s566_s29 }
  0x13   : > { %s167_s8 = sshll.u32 %s157_s7, 4  ;;  %p895_p0 = pnand %p619_p13, %p865_p4  ;;  %s168_s8 = int_to_ptr.vmem [resolvable:$true] %s167_s8 }
  0x14   : > { %p570_p1 = scmp.ge.s32.totalorder %s795_s17, 1  ;;  %s154_s10 = scalar_lea.sflag [#allocation3], %s153_s28 }
  0x15   : > { %p689_p2 = pneg %p895_p0  ;;  %s700_s11 = scalar_lea.vmem %s168_s8, 1024 }
  0x16   : > { %p701_p3 = scmp.ne.s32.totalorder %s168_s8, %s700_s11  ;;  %s797_s18 = smov [#allocation2]  }
  0x17   : > { %s705_s19 = sshll.u32 %s797_s18, 4  ;;  %s706_s19 = int_to_ptr.vmem [resolvable:$false] %s705_s19 }
  0x18   : > { %p703_p5 = pnand %p701_p3, %p689_p2  ;;  %s707_s21 = scalar_lea.vmem %s706_s19, 2048 }
  0x19   : > { %p708_p7 = scmp.lt.s32.totalorder %s168_s8, %s706_s19  ;;  %p709_p10 = scmp.lt.s32.totalorder %s707_s21, %s700_s11 }
  0x1a   : > { %p704_p6 = pneg %p703_p5 }
  0x1b   : > { %p710_p12 = por %p709_p10, %p708_p7 }
  0x1d   : > { %p711_p4 = pnand %p710_p12, %p704_p6 }
  0x1f   : > { %714 = shalt.err (!%p711_p4)
}
  0x20   : > { %s798_s22 = smov 128   ;;  %s799_s23 = smov 8  }
  0x21   : > { %614 = dma.hbm_to_vmem [thread:$0]  (!%p895_p0), %s166_s6, 1024, %s168_s8, %s154_s10, %s798_s22, %s798_s22, %s799_s23  }
  0x22   : > { %p175_p13 = scmp.lt.s32.totalorder %s795_s17, 3 }
  0x24   : > { %p176_p2 = pnand %p570_p1, %p175_p13 }
  0x25   : > { %s908_s28 = sand.u32 (!%p176_p2), 1, %s779_s13  }
  0x26   : > { %179 = sbr.rel (%p176_p2) target bundleno = 272 (0x110), region = 32  ;;  %s571_s29 = sshll.u32 (!%p176_p2), %s908_s28, 6 }
  0x27   : > { %s182_s30 = scalar_lea.sflag (!%p176_p2), [#allocation3], %s908_s28  ;;  %s185_s4 = scalar_lea.vmem (!%p176_p2), [#allocation2], %s571_s29 }
  0x2b   : > { %766 = dma.done.wait (%p871_p8), %s182_s30, 1024  }
  0x2c   : > { %768 = vsyncadd (%p871_p8), %s182_s30, 4294966272  ;;  %v800_v0 = vmov 0   ;;  %v675_v1 = vld [vmem:[%s185_s4 + $0x4] ss:$8 sps:$4 sm:$0xff]   ;;  %v677_v2 = vld [vmem:[%s185_s4 + $0x14] ss:$8 sps:$4 sm:$0xff]  }
  0x2d   : > { %268 = vmatprep.mubr.bf16.mxu0 %v800_v0  ;;  %326 = vmatprep.mubr.bf16.mxu1 %v800_v0  ;;  %v679_v3 = vld [vmem:[%s185_s4] ss:$8 sps:$4 sm:$0xff]   ;;  %v680_v4 = vld [vmem:[%s185_s4 + $0x10] ss:$8 sps:$4 sm:$0xff]   ;;  %vm232_vm0 = vcmask 130048   ;;  %s926_s8 = scalar_lea.vmem [#allocation5], %s571_s29 }
  0x2e   : > { %674 = vset.pattern.permute.xlu0 %v800_v0  ;;  %250 = vmatprep.subr.bf16.mxu0 %v675_v1  ;;  %v213_v5 = vld [vmem:[%s992_s1] sm:$0xf]  ;;  %v683_v7 = vld [vmem:[%s185_s4 + $0x24] ss:$8 sps:$4 sm:$0xff]   ;;  %v684_v8 = vld [vmem:[%s185_s4 + $0x30] ss:$8 sps:$4 sm:$0xff]  }
  0x2f   : > { %308 = vmatprep.subr.bf16.mxu1 %v677_v2  ;;  %v681_v6 = vld [vmem:[%s185_s4 + $0x20] ss:$8 sps:$4 sm:$0xff]   ;;  %251 = vmatpush1.bf16.msra.mxu0 %v679_v3  ;;  %v686_v9 = vld [vmem:[%s185_s4 + $0x34] ss:$8 sps:$4 sm:$0xff]   ;;  %s606_s9 = sshll.u32 %s787_s15, 10  ;;  %s475_s10 = sshll.u32 %s926_s8, 4  ;;  %s939_s10 = int_to_ptr.vmem [resolvable:$true] %s475_s10 }
  0x30   : > { %309 = vmatpush1.bf16.msra.mxu1 %v680_v4  ;;  %v214_v10 = vld [vmem:[%s993_s2] sm:$0xff]  ;;  %367 = vmatprep.subr.bf16.mxu0 %v683_v7  ;;  %s937_s19 = scalar_lea.hbm %s994_s3, %s606_s9  ;;  %s459_s15 = scalar_lea.sflag [#allocation4], %s908_s28 }
  0x31   : > { %219 = vperm.xlu0 %674, %v214_v10   ;;  %426 = vmatprep.subr.bf16.mxu1 %v686_v9  ;;  %s715_s21 = scalar_lea.vmem %s939_s10, 1024  ;;  %s801_s22 = smov [#allocation5]  }
  0x32   : > { %575 = vmatmul.mubr.msk.bf16.vlgmr.msra.gmra.mxu0 %vm232_vm0, %v213_v5  ;;  %p716_p8 = scmp.ne.s32.totalorder %s939_s10, %s715_s21  ;;  %s719_s23 = sshll.u32 %s801_s22, 4  ;;  %s720_s23 = int_to_ptr.vmem [resolvable:$false] %s719_s23 }
  0x33   : > { %580 = vmatmul.mubr.msk.bf16.vlgmr.msra.gmra.mxu1 %vm232_vm0, %v213_v5  ;;  %368 = vmatpush1.bf16.msra.mxu0 %v681_v6  ;;  %s721_s29 = scalar_lea.vmem %s720_s23, 2048  ;;  %p722_p1 = scmp.lt.s32.totalorder %s939_s10, %s720_s23 }
  0x34   : > { %427 = vmatpush1.bf16.msra.mxu1 %v684_v8  ;;  %385 = vmatprep.mubr.bf16.mxu0 %v800_v0  ;;  %p717_p12 = pnand %p716_p8, %p875_p9  ;;  %p723_p3 = scmp.lt.s32.totalorder %s721_s29, %s715_s21 }
  0x35   : > { %444 = vmatprep.mubr.bf16.mxu1 %v800_v0 }
  0x36   : > { %p718_p0 = pneg %p717_p12  ;;  %p724_p5 = por %p723_p3, %p722_p1 }
  0x38   : > { %p725_p6 = pnand %p724_p5, %p718_p0 }
  0x3a   : > { %587 = vmatmul.mubr.msk.bf16.vlgmr.msra.gmra.mxu0 %vm232_vm0, %v213_v5 }
  0x3b   : > { %594 = vmatmul.mubr.msk.bf16.vlgmr.msra.gmra.mxu1 %vm232_vm0, %v213_v5 }
  0xac   : > { %v220_v11 = vpop.permute.xlu0 %219 }
  0xf2   : > { %v270_v12 = vpop.f32.mrf.mxu0 }
  0xf3   : > { %v328_v13 = vpop.f32.mrf.mxu1  ;;  %v271_v14 = vadd.f32 %v270_v12, %v220_v11 }
  0xf4   : > { %v329_v15 = vadd.f32 %v328_v13, %v220_v11  ;;  %v272_v16 = vpop.f32.mrf.mxu0 }
  0xf5   : > { %v330_v17 = vpop.f32.mrf.mxu1  ;;  %v277_v18 = vmax.f32 %v271_v14, 0.0  ;;  %v273_v20 = vadd.f32 %v272_v16, %v220_v11 }
  0xf6   : > { %v335_v19 = vmax.f32 %v329_v15, 0.0  ;;  %v331_v21 = vadd.f32 %v330_v17, %v220_v11  ;;  %v274_v22 = vpop.f32.mrf.mxu0 }
  0xf7   : > { %v332_v23 = vpop.f32.mrf.mxu1  ;;  %279 = vst [vmem:[%s926_s8] sm:$0xff] %v277_v18  ;;  %v278_v24 = vmax.f32 %v273_v20, 0.0 }
  0xf8   : > { %581 = vst [vmem:[%s926_s8 + $0x10] sm:$0xff] %v335_v19  ;;  %v336_v25 = vmax.f32 %v331_v21, 0.0  ;;  %v275_v26 = vpop.f32.mrf.mxu0 }
  0xf9   : > { %v333_v27 = vpop.f32.mrf.mxu1  ;;  %280 = vst [vmem:[%s926_s8 + $0x8] sm:$0xff] %v278_v24 }
  0xfa   : > { %582 = vst [vmem:[%s926_s8 + $0x18] sm:$0xff] %v336_v25  ;;  %v387_v28 = vpop.f32.mrf.mxu0 }
  0xfb   : > { %v446_v29 = vpop.f32.mrf.mxu1  ;;  %v388_v30 = vadd.f32 %v387_v28, %v220_v11 }
  0xfc   : > { %v447_v31 = vadd.f32 %v446_v29, %v220_v11  ;;  %v389_v32 = vpop.f32.mrf.mxu0 }
  0xfd   : > { %v448_v33 = vpop.f32.mrf.mxu1  ;;  %v394_v34 = vmax.f32 %v388_v30, 0.0  ;;  %v390_v36 = vadd.f32 %v389_v32, %v220_v11 }
  0xfe   : > { %v453_v35 = vmax.f32 %v447_v31, 0.0  ;;  %v449_v37 = vadd.f32 %v448_v33, %v220_v11  ;;  %v391_v38 = vpop.f32.mrf.mxu0 }
  0xff   : > { %v450_v39 = vpop.f32.mrf.mxu1  ;;  %588 = vst [vmem:[%s926_s8 + $0x20] sm:$0xff] %v394_v34  ;;  %v395_v40 = vmax.f32 %v390_v36, 0.0 }
 0x100   : > { %595 = vst [vmem:[%s926_s8 + $0x30] sm:$0xff] %v453_v35  ;;  %v454_v41 = vmax.f32 %v449_v37, 0.0  ;;  %v392_v42 = vpop.f32.mrf.mxu0 }
 0x101   : > { %v451_v43 = vpop.f32.mrf.mxu1  ;;  %589 = vst [vmem:[%s926_s8 + $0x28] sm:$0xff] %v395_v40 }
 0x102   : > { %596 = vst [vmem:[%s926_s8 + $0x38] sm:$0xff] %v454_v41 }
 0x103   : > { %728 = shalt.err (!%p725_p6)
}
 0x104   : > { %s729_s30 = scalar_lea.hbm %s937_s19, 1024  ;;  %s733_s6 = scalar_lea.hbm %s994_s3, 2048 }
 0x105   : > { %p730_p7 = scmp.ne.s32.totalorder %s937_s19, %s729_s30  ;;  %p734_p13 = scmp.lt.s32.totalorder %s937_s19, %s994_s3 }
 0x106   : > { %p735_p2 = scmp.lt.s32.totalorder %s733_s6, %s729_s30 }
 0x107   : > { %p731_p10 = pnand %p730_p7, %p875_p9 }
 0x108   : > { %p736_p8 = por %p735_p2, %p734_p13 }
 0x109   : > { %p732_p4 = pneg %p731_p10 }
 0x10b   : > { %p737_p12 = pnand %p736_p8, %p732_p4 }
 0x10d   : > { %740 = shalt.err (!%p737_p12)
}
 0x10e   : > { %s802_s8 = smov 256   ;;  %s803_s9 = smov 16  }
 0x10f   : > { %609 = dma.vmem_to_hbm [thread:$0]  (%p875_p9), %s939_s10, 1024, %s937_s19, %s459_s15, %s802_s8, %s802_s8, %s803_s9  }
 0x110 PF: > { %s490_s11 = sand.u32 1, %s775_s12   ;;  %p1000_p0 = scmp.ge.s32.totalorder %s795_s17, 2 }
 0x111   : > { %s491_s18 = scalar_lea.sflag [#allocation4], %s490_s11 }
 0x112   : > { %p616_p1 = pnand %p1000_p0, %p882_p11 }
 0x114   : > { %p617_p3 = pneg %p616_p1 }
 0x116   : > { %770 = dma.done.wait (%p617_p3), %s491_s18, 1024  }
 0x117   : > { %772 = vsyncadd (%p617_p3), %s491_s18, 4294966272  ;;  %s19_s17 = sadd.s32 1, %s795_s17   ;;  %s1001_s12 = smov %s779_s13 }
 0x118   : > { %p16_p5 = scmp.ge.s32.totalorder %s19_s17, 4   ;;  %s1002_s13 = smov %s783_s14 }
 0x119   : > { %s1003_s14 = smov %s880_s26  ;;  %s1004_s15 = smov %s791_s16 }
 0x11a   : > { %s1005_s16 = smov %s1007_s20  ;;  %18 = sbr.rel (!%p16_p5) target bundleno = 6 (0x6), region = 83 }
 0x11f   :  { %496 = vsyncpa [#allocation3], 1 }
 0x120   :  { %498 = vsyncpa [#allocation3 + $0x1], 1 }
 0x121   :  { %499 = vsyncpa [#allocation4], 1 }
 0x122   :  { %501 = vsyncpa [#allocation4 + $0x1], 1 }

</bundles_post_ra>
